<compile_context>
chip_gen: v7x
topology: tpu7x:2x2x1
jax: 0.10.0
libtpu: 0.0.40
codegen_flags: <defaults>
</compile_context>

<pallas_src>
import math
import jax
import jax.numpy as jnp
from jax.experimental import pallas as pl
from jax.experimental.pallas import tpu as pltpu

_LANE = 128


# ----------------------------- Pallas kernel ---------------------------------
def _gke_fused_kernel(feat_ref, adj_ref, w1_ref, w2_ref, o_ref):
    """One grid step = TB timesteps.

    feat_ref: (TB*N, Din)     node features for the timestep block (flattened)
    adj_ref:  (TB, N, R*N)    per-timestep adjacency, relations concat on lanes (bf16)
    w1_ref:   (Din, R*Hp)     layer-1 weights, relation blocks padded to 128 lanes
    w2_ref:   (Hp, R*Dp)      layer-2 weights, padded rows/cols
    o_ref:    (TB*N, Dp)      output embeddings (padded lanes, sliced wrapper-side)
    """
    tb, n, rn = adj_ref.shape
    r = rn // n
    hp = w1_ref.shape[1] // r
    dp = w2_ref.shape[1] // r

    def rgcn_relu(x_all, w_ref, dout_p):
        # One MXU matmul for the whole timestep block and all relations:
        #   (TB*N, Din) @ (Din, R*Dp)  -> M = TB*N, fewer/larger MXU pushes.
        xw = jnp.dot(x_all, w_ref[...], preferred_element_type=jnp.float32)
        outs = []
        for t in range(tb):                              # static unroll, TB small
            adj_t = adj_ref[t].astype(jnp.float32)       # (N, R*N); bf16->f32 exact for 0/1
            xw_t = xw[t * n:(t + 1) * n, :]              # sublane slice (N % 8 == 0)
            # Restack (N, R*Dp) -> (R*N, Dp): lane slices are 128-aligned because
            # each relation block is padded to a multiple of 128 lanes.
            xw_stk = jnp.concatenate(
                [xw_t[:, j * dout_p:(j + 1) * dout_p] for j in range(r)], axis=0)
            # Single matmul (K = R*N) replaces the R-term accumulation loop.
            outs.append(jnp.dot(adj_t, xw_stk, preferred_element_type=jnp.float32))
        y = jnp.concatenate(outs, axis=0)                # (TB*N, Dp)
        # ReLU stays in f32 on the VPU; dropout(p=0.5) is identity in eval mode.
        # TODO(synk): training-mode F.dropout(p=0.5) not implemented (eval only).
        return jnp.maximum(y, 0.0)

    h = rgcn_relu(feat_ref[...], w1_ref, hp)   # layer 1 (+ ReLU), stays on-chip
    y = rgcn_relu(h, w2_ref, dp)               # layer 2 (+ ReLU)
    o_ref[...] = y.astype(o_ref.dtype)         # 128-lane-wide, unmasked stores


def gke_fused_forward(feats_flat, adj_cat, w1_cat, w2_cat, *, tb):
    """feats_flat: (T_pad*N, Din) f32, adj_cat: (T_pad, N, R*N) bf16,
       w1_cat: (Din, R*Hp) f32, w2_cat: (Hp, R*Dp) f32.
       Returns (T_pad*N, Dp) f32 (padded lanes included)."""
    tn_rows, din = feats_flat.shape
    t_pad, n, rn = adj_cat.shape
    assert tn_rows == t_pad * n and t_pad % tb == 0
    r = rn // n
    hp = w1_cat.shape[1] // r
    dp = w2_cat.shape[1] // r

    return pl.pallas_call(
        _gke_fused_kernel,
        out_shape=jax.ShapeDtypeStruct((t_pad * n, dp), jnp.float32),
        grid_spec=pltpu.PrefetchScalarGridSpec(
            num_scalar_prefetch=0,
            grid=(t_pad // tb,),                                   # blocks of TB timesteps
            in_specs=[
                pl.BlockSpec((tb * n, din), lambda i: (i, 0)),     # features (flattened)
                pl.BlockSpec((tb, n, rn), lambda i: (i, 0, 0)),    # adjacency (bf16)
                pl.BlockSpec((din, r * hp), lambda i: (0, 0)),     # W1 (resident)
                pl.BlockSpec((hp, r * dp), lambda i: (0, 0)),      # W2 (resident)
            ],
            out_specs=pl.BlockSpec((tb * n, dp), lambda i: (i, 0)),
        ),
        compiler_params=pltpu.CompilerParams(
            # Timestep blocks are independent; on v7x with large N, add an
            # N-row "parallel" axis instead and mark the T axis "arbitrary".
            dimension_semantics=("parallel",),
            vmem_limit_bytes=32 * 1024 * 1024,
        ),
    )(feats_flat, adj_cat, w1_cat, w2_cat)


# --------------------------- Parameter construction --------------------------
def _xavier_uniform(key, shape):
    # Matches torch.nn.init.xavier_uniform_ fan computation.
    if len(shape) == 2:
        fan_in, fan_out = shape[1], shape[0]
    else:
        rf = math.prod(shape[2:])
        fan_in = shape[1] * rf
        fan_out = shape[0] * rf
    bound = math.sqrt(6.0 / (fan_in + fan_out))
    return jax.random.uniform(key, shape, jnp.float32, -bound, bound)


def init_graph_know_encoder_params(key, input_dim, output_dim,
                                   num_bases=2, num_rel=2):
    hidden_dim = output_dim
    dims = [(input_dim, hidden_dim), (hidden_dim, output_dim)]
    params = []
    for (din, dout) in dims:
        key, k1, k2 = jax.random.split(key, 3)
        params.append({
            "w_bases": _xavier_uniform(k1, (num_bases, din, dout)),
            "w_rel": _xavier_uniform(k2, (num_rel, num_bases)),
        })
    return params


# ------------------------------- Forward pass --------------------------------
def graph_know_encoder_forward(graph_data, params, *, timestep_block=8):
    """graph_data: list of dicts {'features': (N, Din), 'adj_list': (R, N, N)}.
       Returns stacked embeddings (T, N, Dout)."""
    feats = jnp.stack([g["features"] for g in graph_data]).astype(jnp.float32)   # (T, N, Din)
    adjs = jnp.stack([g["adj_list"] for g in graph_data]).astype(jnp.float32)    # (T, R, N, N)
    T, N, Din = feats.shape
    R = adjs.shape[1]

    # Basis einsum hoisted out of the timestep loop (timestep invariant); the
    # per-relation weights are concatenated on the lane axis with each relation
    # block zero-padded to a multiple of 128 lanes (exact, sliced off later).
    def build_w(layer_p):
        w = jnp.einsum("rb,bio->rio", layer_p["w_rel"], layer_p["w_bases"])  # (R, din, dout)
        r, din, dout = w.shape
        dout_p = -(-dout // _LANE) * _LANE
        w = jnp.pad(w, ((0, 0), (0, 0), (0, dout_p - dout)))
        return jnp.transpose(w, (1, 0, 2)).reshape(din, r * dout_p), dout_p

    w1_cat, Hp = build_w(params[0])                 # (Din, R*Hp)
    w2_cat, Dp = build_w(params[1])                 # (H,   R*Dp)
    H = params[1]["w_bases"].shape[1]
    Dout = params[1]["w_bases"].shape[2]
    # Layer-1 output is Hp-padded with exactly-zero columns, so zero-padding the
    # extra rows of W2 keeps layer 2 exact.
    w2_cat = jnp.pad(w2_cat, ((0, Hp - H), (0, 0)))  # (Hp, R*Dp)

    # Block timesteps: TB per grid step (amortizes per-step pipeline overhead).
    TB = min(T, timestep_block)
    T_pad = -(-T // TB) * TB
    if T_pad != T:
        feats = jnp.pad(feats, ((0, T_pad - T), (0, 0), (0, 0)))
        adjs = jnp.pad(adjs, ((0, T_pad - T), (0, 0), (0, 0), (0, 0)))

    feats_flat = feats.reshape(T_pad * N, Din)
    # Relations concatenated on lanes: adj_cat[t, :, r*N:(r+1)*N] = adj[t, r].
    # bf16 halves the dominant HBM stream; exact for 0/1 adjacencies (keep f32
    # here if adjacencies are weighted/normalized).
    adj_cat = (jnp.transpose(adjs, (0, 2, 1, 3))
               .reshape(T_pad, N, R * N)
               .astype(jnp.bfloat16))

    out = gke_fused_forward(feats_flat, adj_cat, w1_cat, w2_cat, tb=TB)
    return out[:T * N, :Dout].reshape(T, N, Dout)


# Pure-JAX reference for correctness checking (mirrors the torch module, eval mode).
def _reference_forward(graph_data, params):
    embs = []
    for t in range(len(graph_data)):
        x = graph_data[t]["features"].astype(jnp.float32)
        adj = graph_data[t]["adj_list"].astype(jnp.float32)
        for layer_p in params:
            weight = jnp.einsum("rb,bio->rio", layer_p["w_rel"], layer_p["w_bases"])
            supports = [adj[r] @ x for r in range(adj.shape[0])]
            tmp = jnp.concatenate(supports, axis=1)
            w_flat = weight.reshape(weight.shape[0] * weight.shape[1], weight.shape[2])
            x = jnp.maximum(tmp @ w_flat, 0.0)
        embs.append(x)
    return jnp.stack(embs)


# ----------------------------------- Main -------------------------------------
if __name__ == "__main__":
    key = jax.random.PRNGKey(0)

    T = 2            # number of timesteps (graphs)
    N = 16           # nodes per graph
    INPUT_DIM = 32
    OUTPUT_DIM = 32
    NUM_REL = 2

    key, kp = jax.random.split(key)
    params = init_graph_know_encoder_params(kp, INPUT_DIM, OUTPUT_DIM,
                                            num_bases=2, num_rel=NUM_REL)

    graph_data = []
    for t in range(T):
        key, kf, ka = jax.random.split(key, 3)
        feats = jax.random.normal(kf, (N, INPUT_DIM), jnp.float32)
        # Dense random 0/1 adjacency standing in for torch.sparse adjacency.
        adj = (jax.random.uniform(ka, (NUM_REL, N, N)) < 0.3).astype(jnp.float32)
        graph_data.append({"features": feats, "adj_list": adj})

    out = graph_know_encoder_forward(graph_data, params)
    out = jax.block_until_ready(out)

    ref = _reference_forward(graph_data, params)
    assert out.shape == (T, N, OUTPUT_DIM), out.shape
    assert jnp.allclose(out, ref, atol=1e-4, rtol=1e-4), "mismatch vs reference"

    print("KERNEL_OK")
</pallas_src>

<mosaic_0001>
module attributes {stable_mosaic.version = 11 : i64} {
  func.func @_gke_fused_kernel(%arg0: i32, %arg1: memref<32x32xf32, #tpu.memory_space<vmem>>, %arg2: memref<2x16x32xbf16, #tpu.memory_space<vmem>>, %arg3: memref<32x256xf32, #tpu.memory_space<vmem>>, %arg4: memref<128x256xf32, #tpu.memory_space<vmem>>, %arg5: memref<32x128xf32, #tpu.memory_space<vmem>>) attributes {dimension_semantics = [#tpu.dimension_semantics<parallel>], iteration_bounds = array<i64: 1>, scalar_prefetch = 0 : i64, scratch_operands = 0 : i64, tpu.core_type = #tpu.core_type<tc>, window_params = [{transform_indices = @transform_0, window_bounds = array<i64: 32, 32>}, {transform_indices = @transform_1, window_bounds = array<i64: 2, 16, 32>}, {pipeline_mode = #tpu.pipeline_mode<synchronous>, transform_indices = @transform_2, window_bounds = array<i64: 32, 256>}, {pipeline_mode = #tpu.pipeline_mode<synchronous>, transform_indices = @transform_3, window_bounds = array<i64: 128, 256>}, {transform_indices = @transform_4, window_bounds = array<i64: 32, 128>}]} {
    %c0 = arith.constant 0 : index
    %c0_0 = arith.constant 0 : index
    %0 = vector.load %arg1[%c0, %c0_0] : memref<32x32xf32, #tpu.memory_space<vmem>>, vector<32x32xf32>
    %c0_1 = arith.constant 0 : index
    %c0_2 = arith.constant 0 : index
    %1 = vector.load %arg3[%c0_1, %c0_2] : memref<32x256xf32, #tpu.memory_space<vmem>>, vector<32x256xf32>
    %cst = arith.constant dense<0.000000e+00> : vector<32x256xf32>
    %2 = tpu.matmul %0, %1, %cst {dimension_numbers = #tpu.dot_dimension_numbers<[1], [0], [0], [1], [0, 0, 1, 1], [], []>} : vector<32x32xf32>, vector<32x256xf32>, vector<32x256xf32> -> vector<32x256xf32>
    %c0_3 = arith.constant 0 : index
    %c0_4 = arith.constant 0 : index
    %c0_5 = arith.constant 0 : index
    %3 = vector.load %arg2[%c0_3, %c0_4, %c0_5] : memref<2x16x32xbf16, #tpu.memory_space<vmem>>, vector<1x16x32xbf16>
    %4 = vector.shape_cast %3 : vector<1x16x32xbf16> to vector<16x32xbf16>
    %5 = arith.extf %4 : vector<16x32xbf16> to vector<16x32xf32>
    %6 = vector.extract_strided_slice %2 {offsets = [0, 0], sizes = [16, 256], strides = [1, 1]} : vector<32x256xf32> to vector<16x256xf32>
    %7 = vector.extract_strided_slice %6 {offsets = [0, 0], sizes = [16, 128], strides = [1, 1]} : vector<16x256xf32> to vector<16x128xf32>
    %8 = vector.extract_strided_slice %6 {offsets = [0, 128], sizes = [16, 128], strides = [1, 1]} : vector<16x256xf32> to vector<16x128xf32>
    %9 = tpu.concatenate %7, %8 in 0 : vector<16x128xf32>, vector<16x128xf32> -> vector<32x128xf32>
    %cst_6 = arith.constant dense<0.000000e+00> : vector<16x128xf32>
    %10 = tpu.matmul %5, %9, %cst_6 {dimension_numbers = #tpu.dot_dimension_numbers<[1], [0], [0], [1], [0, 0, 1, 1], [], []>} : vector<16x32xf32>, vector<32x128xf32>, vector<16x128xf32> -> vector<16x128xf32>
    %c1 = arith.constant 1 : index
    %c0_7 = arith.constant 0 : index
    %c0_8 = arith.constant 0 : index
    %11 = vector.load %arg2[%c1, %c0_7, %c0_8] : memref<2x16x32xbf16, #tpu.memory_space<vmem>>, vector<1x16x32xbf16>
    %12 = vector.shape_cast %11 : vector<1x16x32xbf16> to vector<16x32xbf16>
    %13 = arith.extf %12 : vector<16x32xbf16> to vector<16x32xf32>
    %14 = vector.extract_strided_slice %2 {offsets = [16, 0], sizes = [16, 256], strides = [1, 1]} : vector<32x256xf32> to vector<16x256xf32>
    %15 = vector.extract_strided_slice %14 {offsets = [0, 0], sizes = [16, 128], strides = [1, 1]} : vector<16x256xf32> to vector<16x128xf32>
    %16 = vector.extract_strided_slice %14 {offsets = [0, 128], sizes = [16, 128], strides = [1, 1]} : vector<16x256xf32> to vector<16x128xf32>
    %17 = tpu.concatenate %15, %16 in 0 : vector<16x128xf32>, vector<16x128xf32> -> vector<32x128xf32>
    %cst_9 = arith.constant dense<0.000000e+00> : vector<16x128xf32>
    %18 = tpu.matmul %13, %17, %cst_9 {dimension_numbers = #tpu.dot_dimension_numbers<[1], [0], [0], [1], [0, 0, 1, 1], [], []>} : vector<16x32xf32>, vector<32x128xf32>, vector<16x128xf32> -> vector<16x128xf32>
    %19 = tpu.concatenate %10, %18 in 0 : vector<16x128xf32>, vector<16x128xf32> -> vector<32x128xf32>
    %cst_10 = arith.constant 0.000000e+00 : f32
    %20 = vector.broadcast %cst_10 : f32 to vector<32x128xf32>
    %21 = arith.maximumf %19, %20 : vector<32x128xf32>
    %c0_11 = arith.constant 0 : index
    %c0_12 = arith.constant 0 : index
    %22 = vector.load %arg4[%c0_11, %c0_12] : memref<128x256xf32, #tpu.memory_space<vmem>>, vector<128x256xf32>
    %cst_13 = arith.constant dense<0.000000e+00> : vector<32x256xf32>
    %23 = tpu.matmul %21, %22, %cst_13 {dimension_numbers = #tpu.dot_dimension_numbers<[1], [0], [0], [1], [0, 0, 1, 1], [], []>} : vector<32x128xf32>, vector<128x256xf32>, vector<32x256xf32> -> vector<32x256xf32>
    %c0_14 = arith.constant 0 : index
    %c0_15 = arith.constant 0 : index
    %c0_16 = arith.constant 0 : index
    %24 = vector.load %arg2[%c0_14, %c0_15, %c0_16] : memref<2x16x32xbf16, #tpu.memory_space<vmem>>, vector<1x16x32xbf16>
    %25 = vector.shape_cast %24 : vector<1x16x32xbf16> to vector<16x32xbf16>
    %26 = arith.extf %25 : vector<16x32xbf16> to vector<16x32xf32>
    %27 = vector.extract_strided_slice %23 {offsets = [0, 0], sizes = [16, 256], strides = [1, 1]} : vector<32x256xf32> to vector<16x256xf32>
    %28 = vector.extract_strided_slice %27 {offsets = [0, 0], sizes = [16, 128], strides = [1, 1]} : vector<16x256xf32> to vector<16x128xf32>
    %29 = vector.extract_strided_slice %27 {offsets = [0, 128], sizes = [16, 128], strides = [1, 1]} : vector<16x256xf32> to vector<16x128xf32>
    %30 = tpu.concatenate %28, %29 in 0 : vector<16x128xf32>, vector<16x128xf32> -> vector<32x128xf32>
    %cst_17 = arith.constant dense<0.000000e+00> : vector<16x128xf32>
    %31 = tpu.matmul %26, %30, %cst_17 {dimension_numbers = #tpu.dot_dimension_numbers<[1], [0], [0], [1], [0, 0, 1, 1], [], []>} : vector<16x32xf32>, vector<32x128xf32>, vector<16x128xf32> -> vector<16x128xf32>
    %c1_18 = arith.constant 1 : index
    %c0_19 = arith.constant 0 : index
    %c0_20 = arith.constant 0 : index
    %32 = vector.load %arg2[%c1_18, %c0_19, %c0_20] : memref<2x16x32xbf16, #tpu.memory_space<vmem>>, vector<1x16x32xbf16>
    %33 = vector.shape_cast %32 : vector<1x16x32xbf16> to vector<16x32xbf16>
    %34 = arith.extf %33 : vector<16x32xbf16> to vector<16x32xf32>
    %35 = vector.extract_strided_slice %23 {offsets = [16, 0], sizes = [16, 256], strides = [1, 1]} : vector<32x256xf32> to vector<16x256xf32>
    %36 = vector.extract_strided_slice %35 {offsets = [0, 0], sizes = [16, 128], strides = [1, 1]} : vector<16x256xf32> to vector<16x128xf32>
    %37 = vector.extract_strided_slice %35 {offsets = [0, 128], sizes = [16, 128], strides = [1, 1]} : vector<16x256xf32> to vector<16x128xf32>
    %38 = tpu.concatenate %36, %37 in 0 : vector<16x128xf32>, vector<16x128xf32> -> vector<32x128xf32>
    %cst_21 = arith.constant dense<0.000000e+00> : vector<16x128xf32>
    %39 = tpu.matmul %34, %38, %cst_21 {dimension_numbers = #tpu.dot_dimension_numbers<[1], [0], [0], [1], [0, 0, 1, 1], [], []>} : vector<16x32xf32>, vector<32x128xf32>, vector<16x128xf32> -> vector<16x128xf32>
    %40 = tpu.concatenate %31, %39 in 0 : vector<16x128xf32>, vector<16x128xf32> -> vector<32x128xf32>
    %cst_22 = arith.constant 0.000000e+00 : f32
    %41 = vector.broadcast %cst_22 : f32 to vector<32x128xf32>
    %42 = arith.maximumf %40, %41 : vector<32x128xf32>
    %c0_23 = arith.constant 0 : index
    %c0_24 = arith.constant 0 : index
    %43 = vector.load %arg5[%c0_23, %c0_24] : memref<32x128xf32, #tpu.memory_space<vmem>>, vector<32x128xf32>
    tpu.vector_store %arg5[%c0_23, %c0_24], %42 {strides = array<i32>} : memref<32x128xf32, #tpu.memory_space<vmem>>, vector<32x128xf32>,
    return
  }
  func.func @transform_0(%arg0: i32) -> (i32, i32) {
    %c0_i32 = arith.constant 0 : i32
    %c0_i32_0 = arith.constant 0 : i32
    return %arg0, %c0_i32 : i32, i32
  }
  func.func @transform_1(%arg0: i32) -> (i32, i32, i32) {
    %c0_i32 = arith.constant 0 : i32
    %c0_i32_0 = arith.constant 0 : i32
    %c0_i32_1 = arith.constant 0 : i32
    return %arg0, %c0_i32, %c0_i32_0 : i32, i32, i32
  }
  func.func @transform_2(%arg0: i32) -> (i32, i32) {
    %c0_i32 = arith.constant 0 : i32
    %c0_i32_0 = arith.constant 0 : i32
    %c0_i32_1 = arith.constant 0 : i32
    return %c0_i32, %c0_i32_0 : i32, i32
  }
  func.func @transform_3(%arg0: i32) -> (i32, i32) {
    %c0_i32 = arith.constant 0 : i32
    %c0_i32_0 = arith.constant 0 : i32
    %c0_i32_1 = arith.constant 0 : i32
    return %c0_i32, %c0_i32_0 : i32, i32
  }
  func.func @transform_4(%arg0: i32) -> (i32, i32) {
    %c0_i32 = arith.constant 0 : i32
    %c0_i32_0 = arith.constant 0 : i32
    return %arg0, %c0_i32 : i32, i32
  }
}

</mosaic_0001>

<bundles_post_ra>
// kernel: tpu_custom_call.1
= control target key start
LH: loop header
LB: loop body
LE: loop exit
PB: predicated region body
PF: predicated region fallthrough
CT: control target
= control target key end

     0   :  { %9 = vsyncpa [#allocation3], 0  ;;  %s1085_s0 = inlined_call_operand.hbm [shape: f32[32,32], index: 0, kind: input, shape index: {}]   ;;  %s1086_s1 = inlined_call_operand.hbm [shape: bf16[2,16,32], index: 1, kind: input, shape index: {}]   ;;  %s1087_s2 = inlined_call_operand.hbm [shape: f32[32,256], index: 2, kind: input, shape index: {}]   ;;  %s1088_s3 = inlined_call_operand.hbm [shape: f32[128,256], index: 3, kind: input, shape index: {}]   ;;  %s1089_s4 = inlined_call_operand.hbm [shape: f32[32,128], index: 4, kind: output, shape index: {}]  }
   0x1   :  { %10 = vsyncpa [#allocation6], 0 }
   0x2   :  { %11 = vsyncpa [#allocation9], 0 }
   0x3   :  { %12 = vsyncpa [#allocation4], 0  ;;  %s950_s15 = smov [#allocation5]   ;;  %s832_s19 = scalar_lea.hbm %s1086_s1, 256 }
   0x4   :  { %s30_s16 = sshll.u32 %s950_s15, 4  ;;  %p833_p0 = scmp.ne.s32.totalorder %s1086_s1, %s832_s19  ;;  %s31_s16 = int_to_ptr.vmem [resolvable:$true] %s30_s16 }
   0x5   :  { %p836_p1 = scmp.lt.u32.totalorder %s832_s19, %s1086_s1 }
   0x7   :  { %p838_p2 = pnand %p836_p1, %p833_p0 }
   0x9   :  { %841 = shalt.err (!%p838_p2)
}
   0xa   :  { %s842_s24 = scalar_lea.vmem %s31_s16, 256  ;;  %p847_p4 = scmp.lt.s32.totalorder %s31_s16, %s31_s16 }
   0xb   :  { %p843_p3 = scmp.ne.s32.totalorder %s31_s16, %s842_s24  ;;  %p848_p5 = scmp.lt.s32.totalorder %s842_s24, %s842_s24 }
   0xd   :  { %p849_p6 = por %p848_p5, %p847_p4 }
   0xf   :  { %p850_p7 = pnand %p849_p6, %p843_p3 }
  0x11   :  { %853 = shalt.err (!%p850_p7)
}
  0x12   :  { %s951_s25 = smov 64   ;;  %s952_s26 = smov 4  }
  0x13   :  { %36 = dma.hbm_to_vmem [thread:$0]  %s1086_s1, 256, %s31_s16, [#allocation6], %s951_s25, %s951_s25, %s952_s26  }
  0x14   :  { %s953_s29 = smov [#allocation2]   ;;  %s854_s7 = scalar_lea.hbm %s1085_s0, 512 }
  0x15   :  { %s18_s30 = sshll.u32 %s953_s29, 4  ;;  %p855_p8 = scmp.ne.s32.totalorder %s1085_s0, %s854_s7  ;;  %s19_s30 = int_to_ptr.vmem [resolvable:$true] %s18_s30 }
  0x16   :  { %p858_p9 = scmp.lt.u32.totalorder %s854_s7, %s1085_s0 }
  0x18   :  { %p860_p10 = pnand %p858_p9, %p855_p8 }
  0x1a   :  { %863 = shalt.err (!%p860_p10)
}
  0x1b   :  { %s864_s12 = scalar_lea.vmem %s19_s30, 512  ;;  %p869_p12 = scmp.lt.s32.totalorder %s19_s30, %s19_s30 }
  0x1c   :  { %p865_p11 = scmp.ne.s32.totalorder %s19_s30, %s864_s12  ;;  %p870_p13 = scmp.lt.s32.totalorder %s864_s12, %s864_s12 }
  0x1e   :  { %p871_p0 = por %p870_p13, %p869_p12 }
  0x20   :  { %p872_p1 = pnand %p871_p0, %p865_p11 }
  0x22   :  { %875 = shalt.err (!%p872_p1)
}
  0x23   :  { %s954_s1 = smov 128   ;;  %s955_s13 = smov 8  }
  0x24   :  { %24 = dma.hbm_to_vmem [thread:$0]  %s1085_s0, 512, %s19_s30, [#allocation3], %s954_s1, %s954_s1, %s955_s13  }
  0x25   :  { %s956_s16 = smov [#allocation7]   ;;  %s876_s20 = scalar_lea.hbm %s1087_s2, 1024 }
  0x26   :  { %s42_s17 = sshll.u32 %s956_s16, 4  ;;  %p877_p2 = scmp.ne.s32.totalorder %s1087_s2, %s876_s20  ;;  %s43_s17 = int_to_ptr.vmem [resolvable:$true] %s42_s17 }
  0x27   :  { %p880_p3 = scmp.lt.u32.totalorder %s876_s20, %s1087_s2 }
  0x29   :  { %p882_p4 = pnand %p880_p3, %p877_p2 }
  0x2b   :  { %885 = shalt.err (!%p882_p4)
}
  0x2c   :  { %s886_s25 = scalar_lea.vmem %s43_s17, 1024  ;;  %p891_p6 = scmp.lt.s32.totalorder %s43_s17, %s43_s17 }
  0x2d   :  { %p887_p5 = scmp.ne.s32.totalorder %s43_s17, %s886_s25  ;;  %p892_p7 = scmp.lt.s32.totalorder %s886_s25, %s886_s25 }
  0x2f   :  { %p893_p8 = por %p892_p7, %p891_p6 }
  0x31   :  { %p894_p9 = pnand %p893_p8, %p887_p5 }
  0x33   :  { %897 = shalt.err (!%p894_p9)
}
  0x34   :  { %s957_s0 = smov 256   ;;  %s958_s26 = smov 16  }
  0x35   :  { %48 = dma.hbm_to_vmem [thread:$0]  %s1087_s2, 1024, %s43_s17, [#allocation6], %s957_s0, %s957_s0, %s958_s26  }
  0x36   :  { %s959_s29 = smov [#allocation8]   ;;  %s898_s7 = scalar_lea.hbm %s1088_s3, 4096 }
  0x37   :  { %s54_s30 = sshll.u32 %s959_s29, 4  ;;  %p899_p10 = scmp.ne.s32.totalorder %s1088_s3, %s898_s7  ;;  %s55_s30 = int_to_ptr.vmem [resolvable:$true] %s54_s30 }
  0x38   :  { %p902_p11 = scmp.lt.u32.totalorder %s898_s7, %s1088_s3 }
  0x3a   :  { %p904_p12 = pnand %p902_p11, %p899_p10 }
  0x3c   :  { %907 = shalt.err (!%p904_p12)
}
  0x3d   :  { %s908_s12 = scalar_lea.vmem %s55_s30, 4096  ;;  %p913_p0 = scmp.lt.s32.totalorder %s55_s30, %s55_s30 }
  0x3e   :  { %p909_p13 = scmp.ne.s32.totalorder %s55_s30, %s908_s12  ;;  %p914_p1 = scmp.lt.s32.totalorder %s908_s12, %s908_s12 }
  0x40   :  { %p915_p2 = por %p914_p1, %p913_p0 }
  0x42   :  { %p916_p3 = pnand %p915_p2, %p909_p13 }
  0x44   :  { %919 = shalt.err (!%p916_p3)
}
  0x45   :  { %60 = dma.hbm_to_vmem [thread:$0]  %s1088_s3, 4096, %s55_s30, [#allocation9], %s957_s0, %s957_s0, %s958_s26  }
  0x46   :  { %942 = dma.done.wait [#allocation3], 512  }
  0x47   :  { %943 = vsyncadd [#allocation3], 4294966784 }
  0x48   :  { %944 = dma.done.wait [#allocation6], 1280  }
  0x49   :  { %945 = vsyncadd [#allocation6], 4294966016 }
  0x4a   :  { %946 = dma.done.wait [#allocation9], 4096  }
  0x4b   :  { %947 = vsyncadd [#allocation9], 4294963200  ;;  %v960_v0 = vmov 0.0   ;;  %v78_v1 = vld [vmem:[#allocation7 + $0x8] sm:$0xff]  ;;  %v80_v2 = vld [vmem:[#allocation7 + $0x18] sm:$0xff]  ;;  %vm85_vm0 = vcmask 261120  }
  0x4c   :  { %162 = vmatprep.mubr.f32.mxu1 %v960_v0  ;;  %458 = vmatprep.mubr.f32.mxu0 %v960_v0  ;;  %v77_v3 = vld [vmem:[#allocation7] sm:$0xff]  ;;  %v748_v4 = vpack.c.bf16 %v80_v2, %v78_v1  ;;  %v79_v5 = vld [vmem:[#allocation7 + $0x10] sm:$0xff]  ;;  %v82_v6 = vld [vmem:[#allocation7 + $0x28] sm:$0xff]  ;;  %s961_s3 = smov [#allocation10]  }
  0x4d   :  { %v84_v7 = vld [vmem:[#allocation7 + $0x38] sm:$0xff]  ;;  %v750_v8 = vpack.c.bf16 %v79_v5, %v77_v3  ;;  %v81_v10 = vld [vmem:[#allocation7 + $0x20] sm:$0xff]  ;;  %v83_v11 = vld [vmem:[#allocation7 + $0x30] sm:$0xff]  ;;  %s646_s15 = sshll.u32 %s961_s3, 4  ;;  %s647_s15 = int_to_ptr.vmem [resolvable:$true] %s646_s15 }
  0x4e   :  { %v752_v9 = vpack.c.bf16 %v84_v7, %v82_v6  ;;  %749 = vmatprep.subr.bf16.mxu1 %v748_v4  ;;  %v754_v12 = vpack.c.bf16 %v83_v11, %v81_v10  ;;  %v73_v13 = vld [vmem:[#allocation2] sm:$0xff]  ;;  %v74_v14 = vld [vmem:[#allocation2 + $0x8] sm:$0xff]  ;;  %v75_v15 = vld [vmem:[#allocation2 + $0x10] sm:$0xff]  ;;  %s920_s16 = scalar_lea.vmem %s647_s15, 512  ;;  %p925_p5 = scmp.lt.s32.totalorder %s647_s15, %s647_s15 }
  0x4f   :  { %751 = vmatpush1.bf16.msra.mxu1 %v750_v8  ;;  %v76_v16 = vld [vmem:[#allocation2 + $0x18] sm:$0xff]  ;;  %v1047_v17 = vld [vmem:[#allocation5] sm:$0xff]   ;;  %v365_v20 = vld [vmem:[#allocation8 + $0x18] sm:$0xff]  ;;  %p921_p4 = scmp.ne.s32.totalorder %s647_s15, %s920_s16  ;;  %p926_p6 = scmp.lt.s32.totalorder %s920_s16, %s920_s16 }
  0x50   :  { %753 = vmatprep.subr.bf16.mxu1 %v752_v9  ;;  %v674_v18 = vunpack.c.l.bf16 %v1047_v17  ;;  %v363_v19 = vld [vmem:[#allocation8 + $0x8] sm:$0xff]  ;;  %v362_v21 = vld [vmem:[#allocation8] sm:$0xff]  ;;  %v364_v23 = vld [vmem:[#allocation8 + $0x10] sm:$0xff]  ;;  %v675_v7 = vunpack.c.h.bf16 %v1047_v17 }
  0x51   :  { %v772_v22 = vpack.c.bf16 %v365_v20, %v363_v19  ;;  %v367_v24 = vld [vmem:[#allocation8 + $0x28] sm:$0xff]  ;;  %v369_v25 = vld [vmem:[#allocation8 + $0x38] sm:$0xff]  ;;  %v774_v26 = vpack.c.bf16 %v364_v23, %v362_v21  ;;  %v366_v28 = vld [vmem:[#allocation8 + $0x20] sm:$0xff]  ;;  %p927_p7 = por %p926_p6, %p925_p5 }
  0x52   :  { %v776_v27 = vpack.c.bf16 %v369_v25, %v367_v24  ;;  %v368_v29 = vld [vmem:[#allocation8 + $0x30] sm:$0xff]  ;;  %v371_v30 = vld [vmem:[#allocation8 + $0x48] sm:$0xff]  ;;  %v373_v31 = vld [vmem:[#allocation8 + $0x58] sm:$0xff] }
  0x53   :  { %755 = vmatpush1.bf16.msra.mxu1 %v754_v12  ;;  %773 = vmatprep.subr.bf16.mxu0 %v772_v22  ;;  %v778_v32 = vpack.c.bf16 %v368_v29, %v366_v28  ;;  %v780_v33 = vpack.c.bf16 %v373_v31, %v371_v30  ;;  %v370_v34 = vld [vmem:[#allocation8 + $0x40] sm:$0xff]  ;;  %v372_v35 = vld [vmem:[#allocation8 + $0x50] sm:$0xff]  ;;  %v375_v36 = vld [vmem:[#allocation8 + $0x68] sm:$0xff]  ;;  %p928_p8 = pnand %p927_p7, %p921_p4 }
  0x54   :  { %775 = vmatpush1.bf16.msra.mxu0 %v774_v26  ;;  %v377_v37 = vld [vmem:[#allocation8 + $0x78] sm:$0xff]  ;;  %v782_v38 = vpack.c.bf16 %v372_v35, %v370_v34  ;;  %v374_v40 = vld [vmem:[#allocation8 + $0x60] sm:$0xff]  ;;  %v376_v41 = vld [vmem:[#allocation8 + $0x70] sm:$0xff] }
  0x55   :  { %777 = vmatprep.subr.bf16.mxu0 %v776_v27  ;;  %v784_v39 = vpack.c.bf16 %v377_v37, %v375_v36  ;;  %v379_v42 = vld [vmem:[#allocation8 + $0x88] sm:$0xff]  ;;  %v381_v43 = vld [vmem:[#allocation8 + $0x98] sm:$0xff]  ;;  %v786_v44 = vpack.c.bf16 %v376_v41, %v374_v40  ;;  %v378_v46 = vld [vmem:[#allocation8 + $0x80] sm:$0xff] }
  0x56   :  { %660 = vmatmul.mubr.msk.f32.vlgmr.msra.gmra.mrb[0].mxu1 %vm85_vm0, %v73_v13  ;;  %v788_v45 = vpack.c.bf16 %v381_v43, %v379_v42  ;;  %v380_v47 = vld [vmem:[#allocation8 + $0x90] sm:$0xff]  ;;  %v383_v48 = vld [vmem:[#allocation8 + $0xa8] sm:$0xff]  ;;  %v385_v49 = vld [vmem:[#allocation8 + $0xb8] sm:$0xff] }
  0x57   :  { %168 = vmatprep.mubr.f32.mxu1 %v960_v0  ;;  %v790_v50 = vpack.c.bf16 %v380_v47, %v378_v46  ;;  %v792_v51 = vpack.c.bf16 %v385_v49, %v383_v48  ;;  %v382_v52 = vld [vmem:[#allocation8 + $0xa0] sm:$0xff]  ;;  %v384_v53 = vld [vmem:[#allocation8 + $0xb0] sm:$0xff]  ;;  %v387_v54 = vld [vmem:[#allocation8 + $0xc8] sm:$0xff] }
  0x58   :  { %779 = vmatpush1.bf16.msra.mxu0 %v778_v32  ;;  %v389_v55 = vld [vmem:[#allocation8 + $0xd8] sm:$0xff]  ;;  %v794_v56 = vpack.c.bf16 %v384_v53, %v382_v52  ;;  %v386_v58 = vld [vmem:[#allocation8 + $0xc0] sm:$0xff]  ;;  %v388_v59 = vld [vmem:[#allocation8 + $0xd0] sm:$0xff] }
  0x59   :  { %781 = vmatprep.subr.bf16.mxu0 %v780_v33  ;;  %v796_v57 = vpack.c.bf16 %v389_v55, %v387_v54  ;;  %v798_v60 = vpack.c.bf16 %v388_v59, %v386_v58  ;;  %v1053_v6 = vld [vmem:[#allocation5 + $0x8] sm:$0xff]   ;;  %v390_v19 = vld [vmem:[#allocation8 + $0xe0] sm:$0xff]  ;;  %v392_v20 = vld [vmem:[#allocation8 + $0xf0] sm:$0xff] }
  0x5a   :  { %661 = vmatmul.mubr.msk.f32.gmra.mrb[2].mxu1 %vm85_vm0, %v74_v14  ;;  %v678_v9 = vunpack.c.l.bf16 %v1053_v6  ;;  %v679_v13 = vunpack.c.h.bf16 %v1053_v6  ;;  %v391_v14 = vld [vmem:[#allocation8 + $0xe8] sm:$0xff]  ;;  %v802_v21 = vpack.c.bf16 %v392_v20, %v390_v19 }
  0x5b   :  { %174 = vmatprep.mubr.f32.mxu1 %v960_v0 }
  0x5c   :  { %783 = vmatpush1.bf16.msra.mxu0 %v782_v38 }
  0x5d   :  { %785 = vmatprep.subr.bf16.mxu0 %v784_v39 }
  0x5e   :  { %662 = vmatmul.mubr.msk.f32.gmra.mrb[4].mxu1 %vm85_vm0, %v75_v15  ;;  %v393_v15 = vld [vmem:[#allocation8 + $0xf8] sm:$0xff] }
  0x5f   :  { %180 = vmatprep.mubr.f32.mxu1 %v960_v0 }
  0x60   :  { %787 = vmatpush1.bf16.msra.mxu0 %v786_v44 }
  0x61   :  { %789 = vmatprep.subr.bf16.mxu0 %v788_v45 }
  0x62   :  { %663 = vmatmul.mubr.msk.f32.gmra.mrb[6].mxu1 %vm85_vm0, %v76_v16  ;;  %v800_v16 = vpack.c.bf16 %v393_v15, %v391_v14 }
  0x63   :  { %712 = vmatprep.mubr.msk.f32.mxu1 %vm85_vm0, %v674_v18 }
  0x64   :  { %791 = vmatpush1.bf16.msra.mxu0 %v790_v50 }
  0x65   :  { %793 = vmatprep.subr.bf16.mxu0 %v792_v51 }
  0x68   :  { %795 = vmatpush1.bf16.msra.mxu0 %v794_v56 }
  0x69   :  { %797 = vmatprep.subr.bf16.mxu0 %v796_v57 }
  0x6c   :  { %799 = vmatpush1.bf16.msra.mxu0 %v798_v60 }
  0x6d   :  { %801 = vmatprep.subr.bf16.mxu0 %v800_v16 }
  0x70   :  { %803 = vmatpush1.bf16.msra.mxu0 %v802_v21 }
 0x129   :  { %v164_v61 = vpop.f32.mrb[0].mxu1 }
 0x12a   :  { %v166_v62 = vpop.f32.mrb[1].mxu1 }
 0x12d   :  { %v170_v63 = vpop.f32.mrb[2].mxu1 }
 0x12e   :  { %v756_v1 = vpack.c.bf16 %v170_v63, %v164_v61  ;;  %v172_v2 = vpop.f32.mrb[3].mxu1 }
 0x12f   :  { %v760_v3 = vpack.c.bf16 %v172_v2, %v166_v62 }
 0x130   :  { %757 = vmatprep.subr.bf16.mxu1 %v756_v1 }
 0x131   :  { %759 = vmatpush3.bf16.msra.mxu1 %v756_v1  ;;  %v176_v4 = vpop.f32.mrb[4].mxu1 }
 0x132   :  { %761 = vmatprep.subr.bf16.mxu1 %v760_v3  ;;  %v178_v5 = vpop.f32.mrb[5].mxu1 }
 0x135   :  { %v182_v8 = vpop.f32.mrb[6].mxu1  ;;  %763 = vmatpush3.bf16.msra.mxu1 %v760_v3 }
 0x136   :  { %v764_v10 = vpack.c.bf16 %v182_v8, %v176_v4  ;;  %v184_v11 = vpop.f32.mrb[7].mxu1 }
 0x137   :  { %v768_v12 = vpack.c.bf16 %v184_v11, %v178_v5 }
 0x138   :  { %713 = vmatmul.mubr.msk.f32.vlgmr.msra.gmra.mrb[8].mxu1 %vm85_vm0, %v675_v7  ;;  %765 = vmatprep.subr.bf16.mxu1 %v764_v10 }
 0x139   :  { %767 = vmatpush3.bf16.msra.mxu1 %v764_v10  ;;  %723 = vmatprep.mubr.msk.f32.mxu1 %vm85_vm0, %v678_v9 }
 0x13a   :  { %769 = vmatprep.subr.bf16.mxu1 %v768_v12 }
 0x13d   :  { %771 = vmatpush3.bf16.msra.mxu1 %v768_v12 }
 0x140   :  { %724 = vmatmul.mubr.msk.f32.vlgmr.msra.gmra.mrb[10].mxu1 %vm85_vm0, %v679_v13 }
 0x141   :  { %734 = vmatprep.mubr.msk.f32.mxu1 %vm85_vm0, %v674_v18 }
 0x20b   :  { %v714_v22 = vpop.f32.mrb[8].mxu1 }
 0x20c   :  { %v263_v23 = vpop.f32.mrb[9].mxu1  ;;  %v359_v25 = vmax.f32 %v714_v22, 0.0 }
 0x20d   :  { %v358_v24 = vmax.f32 %v263_v23, 0.0 }
 0x20f   :  { %459 = vmatmul.mubr.f32.vlgmr.msra.gmra.mrb[0].mxu0 %v358_v24 }
 0x210   :  { %464 = vmatprep.mubr.f32.mxu0 %v960_v0 }
 0x213   :  { %v725_v26 = vpop.f32.mrb[10].mxu1  ;;  %465 = vmatmul.mubr.f32.gmra.mrb[2].mxu0 %v359_v25 }
 0x214   :  { %v349_v17 = vpop.f32.mrb[11].mxu1  ;;  %470 = vmatprep.mubr.f32.mxu0 %v960_v0  ;;  %v361_v27 = vmax.f32 %v725_v26, 0.0 }
 0x215   :  { %v360_v18 = vmax.f32 %v349_v17, 0.0 }
 0x217   :  { %471 = vmatmul.mubr.f32.gmra.mrb[4].mxu0 %v360_v18 }
 0x218   :  { %476 = vmatprep.mubr.f32.mxu0 %v960_v0 }
 0x21b   :  { %477 = vmatmul.mubr.f32.gmra.mrb[6].mxu0 %v361_v27 }
 0x2e2   :  { %v460_v28 = vpop.f32.mrb[0].mxu0 }
 0x2e3   :  { %v462_v29 = vpop.f32.mrb[1].mxu0 }
 0x2e6   :  { %v466_v30 = vpop.f32.mrb[2].mxu0 }
 0x2e7   :  { %v804_v31 = vpack.c.bf16 %v466_v30, %v460_v28  ;;  %v468_v32 = vpop.f32.mrb[3].mxu0 }
 0x2e8   :  { %v808_v33 = vpack.c.bf16 %v468_v32, %v462_v29 }
 0x2e9   :  { %805 = vmatprep.subr.bf16.mxu1 %v804_v31 }
 0x2ea   :  { %807 = vmatpush3.bf16.msra.mxu1 %v804_v31  ;;  %v472_v34 = vpop.f32.mrb[4].mxu0 }
 0x2eb   :  { %v474_v35 = vpop.f32.mrb[5].mxu0  ;;  %809 = vmatprep.subr.bf16.mxu1 %v808_v33 }
 0x2ee   :  { %v478_v36 = vpop.f32.mrb[6].mxu0  ;;  %811 = vmatpush3.bf16.msra.mxu1 %v808_v33 }
 0x2ef   :  { %v812_v37 = vpack.c.bf16 %v478_v36, %v472_v34  ;;  %v480_v38 = vpop.f32.mrb[7].mxu0 }
 0x2f0   :  { %v816_v39 = vpack.c.bf16 %v480_v38, %v474_v35 }
 0x2f1   :  { %813 = vmatprep.subr.bf16.mxu1 %v812_v37  ;;  %735 = vmatmul.mubr.msk.f32.vlgmr.msra.gmra.mrb[12].mxu1 %vm85_vm0, %v675_v7 }
 0x2f2   :  { %815 = vmatpush3.bf16.msra.mxu1 %v812_v37  ;;  %745 = vmatprep.mubr.msk.f32.mxu1 %vm85_vm0, %v678_v9 }
 0x2f3   :  { %817 = vmatprep.subr.bf16.mxu1 %v816_v39 }
 0x2f6   :  { %819 = vmatpush3.bf16.msra.mxu1 %v816_v39 }
 0x2f9   :  { %746 = vmatmul.mubr.msk.f32.vlgmr.msra.gmra.mrb[14].mxu1 %vm85_vm0, %v679_v13 }
 0x3c4   :  { %v736_v0 = vpop.f32.mrb[12].mxu1 }
 0x3c5   :  { %v634_v40 = vmax.f32 %v736_v0, 0.0  ;;  %v549_v41 = vpop.f32.mrb[13].mxu1 }
 0x3c6   :  { %v633_v42 = vmax.f32 %v549_v41, 0.0 }
 0x3c7   :  { %638 = vst [vmem:[#allocation10 + $0x8] sm:$0xff] %v634_v40 }
 0x3c8   :  { %637 = vst [vmem:[#allocation10] sm:$0xff] %v633_v42 }
 0x3cc   :  { %v747_v43 = vpop.f32.mrb[14].mxu1 }
 0x3cd   :  { %v636_v44 = vmax.f32 %v747_v43, 0.0  ;;  %v624_v45 = vpop.f32.mrb[15].mxu1 }
 0x3ce   :  { %v635_v46 = vmax.f32 %v624_v45, 0.0 }
 0x3cf   :  { %640 = vst [vmem:[#allocation10 + $0x18] sm:$0xff] %v636_v44 }
 0x3d0   :  { %639 = vst [vmem:[#allocation10 + $0x10] sm:$0xff] %v635_v46 }
 0x3d1   :  { %931 = shalt.err (!%p928_p8)
}
 0x3d2   :  { %s932_s19 = scalar_lea.hbm %s1089_s4, 512 }
 0x3d3   :  { %p933_p9 = scmp.ne.s32.totalorder %s1089_s4, %s932_s19  ;;  %p936_p10 = scmp.lt.u32.totalorder %s932_s19, %s1089_s4 }
 0x3d5   :  { %p938_p11 = pnand %p936_p10, %p933_p9 }
 0x3d7   :  { %941 = shalt.err (!%p938_p11)
}
 0x3d8   :  { %652 = dma.vmem_to_hbm [thread:$0]  %s647_s15, 512, %s1089_s4, [#allocation4], %s954_s1, %s954_s1, %s955_s13  }
 0x3d9   :  { %948 = dma.done.wait [#allocation4], 512  }
 0x3da   :  { %949 = vsyncadd [#allocation4], 4294966784 }
 0x3db   :  { %656 = vsyncpa [#allocation3], 1 }
 0x3dc   :  { %657 = vsyncpa [#allocation6], 1 }
 0x3dd   :  { %658 = vsyncpa [#allocation9], 1 }
 0x3de   :  { %659 = vsyncpa [#allocation4], 1 }

</bundles_post_ra>
